<compile_context>
chip_gen: v6e
topology: v6e:2x2x1
jax: 0.10.0
libtpu: 0.0.40
codegen_flags: <defaults>
</compile_context>

<pallas_src>
import functools

import jax
import jax.numpy as jnp
from jax.experimental import pallas as pl
from jax.experimental.pallas import tpu as pltpu


def _loss_tile_kernel(logits_ref, tgt_ref, partial_ref, *, n_tokens, block_rows):
    """One tile of rows -> per-tile [sum of target log-probs, count(target != 1)]."""
    x = logits_ref[...]                       # (TN, V), native dtype (no full-tile f32 cast)
    tgt = tgt_ref[...]                        # (TN, 1) int32

    # Max / compare / select stay in the native dtype (all exact ops; packed
    # bf16 VALU paths on v6e/v7x).  Only the exp/LSE accumulation runs in f32;
    # the f32 subtract is exact because bf16 values are exactly representable.
    m = jnp.max(x, axis=-1, keepdims=True)                                  # (TN, 1)

    # Fused gather: pick the target logit straight off the native-dtype tile.
    col = jax.lax.broadcasted_iota(jnp.int32, x.shape, 1)
    tgt_logit = jnp.sum(jnp.where(col == tgt, x, 0), axis=-1,
                        keepdims=True).astype(jnp.float32)                  # (TN, 1)

    mf = m.astype(jnp.float32)
    e = jnp.exp(x.astype(jnp.float32) - mf)                                 # (TN, V) f32
    lse = jnp.log(jnp.sum(e, axis=-1, keepdims=True)) + mf                  # (TN, 1)
    picked = tgt_logit - lse                                                # (TN, 1)

    # Fused norm partial: count of rows with target != 1.
    not_pad = (tgt != 1).astype(jnp.float32)                                # (TN, 1)

    if n_tokens % block_rows != 0:
        # Ragged last tile: rows beyond n_tokens are padding -> drop them
        # (select, not multiply, so garbage/NaN padding is harmless).
        row = (pl.program_id(0) * block_rows
               + jax.lax.broadcasted_iota(jnp.int32, picked.shape, 0))
        valid = row < n_tokens
        picked = jnp.where(valid, picked, 0.0)
        not_pad = jnp.where(valid, not_pad, 0.0)

    tile_sum = jnp.sum(picked)
    tile_norm = jnp.sum(not_pad)

    # Sublane 0 carries the log-prob partial, sublane 1 (and beyond) the norm
    # partial; a single unmasked lane/sublane-dense vst per tile.
    sub = jax.lax.broadcasted_iota(jnp.int32, partial_ref.shape, 1)
    partial_ref[...] = jnp.where(sub == 0, tile_sum, tile_norm)


def summarisation_loss(output, target, *, block_rows=None):
    """output: [B, S, V] float (any dtype), target: [B, S] int. Returns scalar f32."""
    B, S, V = output.shape
    N = B * S
    logits = output.reshape(N, V)                  # free reshape, NO dtype cast here
    tgt = target.reshape(N, 1).astype(jnp.int32)

    itemsize = jnp.dtype(output.dtype).itemsize
    # Dtype-aware sublane alignment: 8 rows for f32, 16 for bf16, 32 for int8/fp8.
    sublane = max(8, 32 // max(itemsize, 1))

    if block_rows is None:
        # Per-tile working set: 2x double-buffered native logits tile PLUS
        # ~3x full-tile 32-bit temporaries (f32 exp input, f32 exp output,
        # int32 iota).  Keep the total around 24 MiB -> comfortably under the
        # 32 MiB scoped VMEM limit on every generation (incl. v7x, 64 MiB phys).
        bytes_per_row = V * (2 * itemsize + 3 * 4)
        budget = 24 * 1024 * 1024
        block_rows = max(sublane, budget // max(bytes_per_row, 1))

    if block_rows >= N:
        block_rows = N                              # single tile; block == full dim
    else:
        block_rows = max(sublane, (block_rows // sublane) * sublane)

    num_tiles = pl.cdiv(N, block_rows)

    kernel = functools.partial(
        _loss_tile_kernel, n_tokens=N, block_rows=block_rows)

    cost = pl.CostEstimate(
        flops=6 * N * V,
        transcendentals=N * V,
        bytes_accessed=N * V * itemsize + N * 4 + num_tiles * 8 * 128 * 4,
    )

    partials = pl.pallas_call(
        kernel,
        out_shape=jax.ShapeDtypeStruct((num_tiles, 8, 128), jnp.float32),
        grid=(num_tiles,),
        in_specs=[
            pl.BlockSpec((block_rows, V), lambda i: (i, 0)),
            pl.BlockSpec((block_rows, 1), lambda i: (i, 0)),
        ],
        out_specs=pl.BlockSpec((1, 8, 128), lambda i: (i, 0, 0)),
        compiler_params=pltpu.CompilerParams(
            dimension_semantics=("parallel",),       # shards tiles across v7x's 2 TCs
            vmem_limit_bytes=32 * 1024 * 1024,
        ),
        cost_estimate=cost,
    )(logits, tgt)

    # Tiny trailing reductions in plain JAX (one scalar pair per tile).
    sum_logprob = jnp.sum(partials[:, 0, 0])
    norm = jnp.sum(partials[:, 1, 0])                       # fused (target != 1).sum()
    ce = -sum_logprob / jnp.float32(N)                      # CrossEntropyLoss (mean)
    # TODO(synk): norm == 0 (all targets == 1) gives inf/nan, same as PyTorch.
    return ce / norm


def _reference(output, target):
    # Pure-JAX reference mirroring the PyTorch module (with the double log_softmax).
    B, S, V = output.shape
    x = jax.nn.log_softmax(output.astype(jnp.float32), axis=-1).reshape(-1, V)
    t = target.reshape(-1)
    z = jax.nn.log_softmax(x, axis=-1)
    ce = -jnp.mean(z[jnp.arange(x.shape[0]), t])
    norm = jnp.sum(t != 1).astype(jnp.float32)
    return ce / norm


if __name__ == "__main__":
    key = jax.random.PRNGKey(0)
    k1, k2, k3, k4 = jax.random.split(key, 4)

    # Test 1: small f32 problem, single tile (heuristic tile sizing).
    B, S, V = 2, 8, 32
    out1 = jax.random.normal(k1, (B, S, V), dtype=jnp.float32)
    tgt1 = jax.random.randint(k2, (B, S), 0, V, dtype=jnp.int32)
    loss1 = jax.block_until_ready(summarisation_loss(out1, tgt1))
    ref1 = _reference(out1, tgt1)
    assert jnp.allclose(loss1, ref1, rtol=1e-5, atol=1e-5), (loss1, ref1)

    # Test 2: bf16 input, multi-tile grid with a ragged last tile (N=20, TN=16),
    # some targets == 1 so the fused norm count is exercised.
    B2, S2, V2 = 4, 5, 32
    out2 = jax.random.normal(k3, (B2, S2, V2), dtype=jnp.bfloat16)
    tgt2 = jax.random.randint(k4, (B2, S2), 0, V2, dtype=jnp.int32)
    tgt2 = tgt2.at[0, 0].set(1).at[1, 2].set(1)
    loss2 = jax.block_until_ready(summarisation_loss(out2, tgt2, block_rows=16))
    ref2 = _reference(out2, tgt2)
    assert jnp.allclose(loss2, ref2, rtol=1e-5, atol=1e-5), (loss2, ref2)

    print("KERNEL_OK")
</pallas_src>

<mosaic_0001>
module attributes {stable_mosaic.version = 11 : i64} {
  func.func @_loss_tile_kernel(%arg0: i32, %arg1: memref<16x32xf32, #tpu.memory_space<vmem>>, %arg2: memref<16x1xi32, #tpu.memory_space<vmem>>, %arg3: memref<1x8x128xf32, #tpu.memory_space<vmem>>) attributes {dimension_semantics = [#tpu.dimension_semantics<parallel>], iteration_bounds = array<i64: 1>, scalar_prefetch = 0 : i64, scratch_operands = 0 : i64, tpu.core_type = #tpu.core_type<tc>, window_params = [{transform_indices = @transform_0, window_bounds = array<i64: 16, 32>}, {transform_indices = @transform_1, window_bounds = array<i64: 16, 1>}, {transform_indices = @transform_2, window_bounds = array<i64: 1, 8, 128>}]} {
    %c0 = arith.constant 0 : index
    %c0_0 = arith.constant 0 : index
    %0 = vector.load %arg1[%c0, %c0_0] : memref<16x32xf32, #tpu.memory_space<vmem>>, vector<16x32xf32>
    %c0_1 = arith.constant 0 : index
    %c0_2 = arith.constant 0 : index
    %1 = vector.load %arg2[%c0_1, %c0_2] : memref<16x1xi32, #tpu.memory_space<vmem>>, vector<16x1xi32>
    %cst = arith.constant dense<0xFF800000> : vector<16xf32>
    %2 = vector.multi_reduction <maximumf>, %0, %cst [1] : vector<16x32xf32> to vector<16xf32>
    %3 = vector.shape_cast %2 : vector<16xf32> to vector<16x1xf32>
    %4 = tpu.iota {dimensions = array<i32: 1>} : vector<16x32xi32>
    %5 = vector.broadcast %1 : vector<16x1xi32> to vector<16x32xi32>
    %6 = arith.cmpi eq, %4, %5 : vector<16x32xi32>
    %c0_i32 = arith.constant 0 : i32
    %7 = arith.sitofp %c0_i32 : i32 to f32
    %8 = vector.broadcast %7 : f32 to vector<16x32xf32>
    %9 = arith.select %6, %0, %8 : vector<16x32xi1>, vector<16x32xf32>
    %cst_3 = arith.constant dense<0.000000e+00> : vector<16xf32>
    %10 = vector.multi_reduction <add>, %9, %cst_3 [1] : vector<16x32xf32> to vector<16xf32>
    %11 = vector.shape_cast %10 : vector<16xf32> to vector<16x1xf32>
    %12 = vector.broadcast %3 : vector<16x1xf32> to vector<16x32xf32>
    %13 = arith.subf %0, %12 : vector<16x32xf32>
    %14 = math.exp %13 : vector<16x32xf32>
    %cst_4 = arith.constant dense<0.000000e+00> : vector<16xf32>
    %15 = vector.multi_reduction <add>, %14, %cst_4 [1] : vector<16x32xf32> to vector<16xf32>
    %16 = vector.shape_cast %15 : vector<16xf32> to vector<16x1xf32>
    %17 = math.log %16 : vector<16x1xf32>
    %18 = arith.addf %17, %3 : vector<16x1xf32>
    %19 = arith.subf %11, %18 : vector<16x1xf32>
    %c1_i32 = arith.constant 1 : i32
    %20 = vector.broadcast %c1_i32 : i32 to vector<16x1xi32>
    %21 = arith.cmpi ne, %1, %20 : vector<16x1xi32>
    %22 = arith.extui %21 : vector<16x1xi1> to vector<16x1xi32>
    %23 = arith.sitofp %22 : vector<16x1xi32> to vector<16x1xf32>
    %24 = vector.shape_cast %19 : vector<16x1xf32> to vector<1x16x1xf32>
    %cst_5 = arith.constant dense<0.000000e+00> : vector<1xf32>
    %25 = vector.multi_reduction <add>, %24, %cst_5 [1, 2] : vector<1x16x1xf32> to vector<1xf32>
    %26 = vector.shape_cast %25 : vector<1xf32> to vector<1x1x1xf32>
    %27 = vector.extract %26[0, 0, 0] : f32 from vector<1x1x1xf32>
    %28 = vector.shape_cast %23 : vector<16x1xf32> to vector<1x16x1xf32>
    %cst_6 = arith.constant dense<0.000000e+00> : vector<1xf32>
    %29 = vector.multi_reduction <add>, %28, %cst_6 [1, 2] : vector<1x16x1xf32> to vector<1xf32>
    %30 = vector.shape_cast %29 : vector<1xf32> to vector<1x1x1xf32>
    %31 = vector.extract %30[0, 0, 0] : f32 from vector<1x1x1xf32>
    %32 = tpu.iota {dimensions = array<i32: 1>} : vector<1x8x128xi32>
    %c0_i32_7 = arith.constant 0 : i32
    %33 = vector.broadcast %c0_i32_7 : i32 to vector<1x8x128xi32>
    %34 = arith.cmpi eq, %32, %33 : vector<1x8x128xi32>
    %35 = vector.broadcast %27 : f32 to vector<1x8x128xf32>
    %36 = vector.broadcast %31 : f32 to vector<1x8x128xf32>
    %37 = arith.select %34, %35, %36 : vector<1x8x128xi1>, vector<1x8x128xf32>
    %c0_8 = arith.constant 0 : index
    %c0_9 = arith.constant 0 : index
    %c0_10 = arith.constant 0 : index
    %38 = vector.load %arg3[%c0_8, %c0_9, %c0_10] : memref<1x8x128xf32, #tpu.memory_space<vmem>>, vector<1x8x128xf32>
    tpu.vector_store %arg3[%c0_8, %c0_9, %c0_10], %37 {strides = array<i32>} : memref<1x8x128xf32, #tpu.memory_space<vmem>>, vector<1x8x128xf32>,
    return
  }
  func.func @transform_0(%arg0: i32) -> (i32, i32) {
    %c0_i32 = arith.constant 0 : i32
    %c0_i32_0 = arith.constant 0 : i32
    return %arg0, %c0_i32 : i32, i32
  }
  func.func @transform_1(%arg0: i32) -> (i32, i32) {
    %c0_i32 = arith.constant 0 : i32
    %c0_i32_0 = arith.constant 0 : i32
    return %arg0, %c0_i32 : i32, i32
  }
  func.func @transform_2(%arg0: i32) -> (i32, i32, i32) {
    %c0_i32 = arith.constant 0 : i32
    %c0_i32_0 = arith.constant 0 : i32
    %c0_i32_1 = arith.constant 0 : i32
    return %arg0, %c0_i32, %c0_i32_0 : i32, i32, i32
  }
}

</mosaic_0001>

<bundles_post_ra>
// kernel: tpu_custom_call.1
= control target key start
LH: loop header
LB: loop body
LE: loop exit
PB: predicated region body
PF: predicated region fallthrough
CT: control target
= control target key end

     0   :  { %vm16_vm0 = vcmask 261120   ;;  %v154_v4 = vmov 0   ;;  %s197_s0 = inlined_call_operand.vmem [shape: f32[16,32], index: 0, kind: input, shape index: {}]   ;;  %s198_s1 = inlined_call_operand.vmem [shape: s32[16,1], index: 1, kind: input, shape index: {}]   ;;  %s199_s2 = inlined_call_operand.hbm [shape: f32[1,8,128], index: 2, kind: output, shape index: {}]  }
   0x1   :  { %v12_v0 = vld [vmem:[%s197_s0] sm:$0xff]  ;;  %v13_v1 = vld [vmem:[%s197_s0 + $0x8] sm:$0xff]  ;;  %122 = vset.pattern.permute.xlu1 %v154_v4  ;;  %123 = vset.pattern.permute.xlu0 %v154_v4 }
   0x2   :  { %v14_v2 = vld [vmem:[%s198_s1] sm:$0xff]  ;;  %v17_v3 = vsel %vm16_vm0, %v12_v0, -inf }
   0x3   :  { %7 = vsyncpa [#allocation3], 0  ;;  %18 = vmax.xlane.f32.xlu0 %v17_v3  ;;  %26 = vperm.xlu1 %122, %v14_v2   ;;  %v20_v5 = vsel %vm16_vm0, %v13_v1, -inf  ;;  %v15_v6 = vld [vmem:[%s198_s1 + $0x8] sm:$0xff]  ;;  %v23_v13 = vlaneseq  ;;  %vm61_vm3 = vcmp.ne.s32.totalorder %v14_v2, 1  ;;  %v155_v25 = vmov 0.0  }
   0x4   :  { %v113_v26 = vsel %vm61_vm3, 1.0, %v155_v25  ;;  %vm62_vm4 = vcmp.ne.s32.totalorder %v15_v6, 1  ;;  %vm67_vm5 = vcmask 7168   ;;  %s156_s1 = smov [#allocation2]  }
   0x5   :  { %v24_v15 = vand.u32 127, %v23_v13  ;;  %v114_v27 = vsel %vm62_vm4, 1.0, %v155_v25  ;;  %v80_v28 = vsel %vm67_vm5, %v113_v26, 0.0  ;;  %v93_v60 = vshrl.u32 %v23_v13, 7  ;;  %s105_s17 = sshll.u32 %s156_s1, 4  ;;  %s106_s17 = int_to_ptr.vmem [resolvable:$true] %s105_s17 }
   0x6   :  { %v81_v29 = vsel %vm67_vm5, %v114_v27, 0.0  ;;  %s132_s19 = scalar_lea.vmem %s106_s17, 128  ;;  %p137_p1 = scmp.lt.s32.totalorder %s106_s17, %s106_s17 }
   0x7   :  { %21 = vmax.xlane.f32.xlu0 %v20_v5  ;;  %29 = vperm.xlu1 %122, %v15_v6   ;;  %v82_v30 = vadd.f32 %v81_v29, %v80_v28  ;;  %vm94_vm6 = vcmp.eq.s32.totalorder %v93_v60, 0  ;;  %p133_p0 = scmp.ne.s32.totalorder %s106_s17, %s132_s19  ;;  %p138_p2 = scmp.lt.s32.totalorder %s132_s19, %s132_s19 }
   0x9   :  { %p139_p3 = por %p138_p2, %p137_p1 }
   0xb   :  { %p140_p4 = pnand %p139_p3, %p133_p0 }
  0x7e   :  { %v27_v14 = vpop.permute.xlu1 %26 }
  0x7f   :  { %vm31_vm1 = vcmp.eq.s32.totalorder %v24_v15, %v27_v14 }
  0x80   :  { %v33_v18 = vsel %vm31_vm1, %v12_v0, 0.0 }
  0x81   :  { %v35_v20 = vsel %vm16_vm0, %v33_v18, 0.0 }
  0x82   :  { %v30_v16 = vpop.permute.xlu1 %29 }
  0x83   :  { %vm32_vm2 = vcmp.eq.s32.totalorder %v24_v15, %v30_v16 }
  0x84   :  { %v34_v22 = vsel %vm32_vm2, %v13_v1, 0.0 }
  0x85   :  { %v38_v24 = vsel %vm16_vm0, %v34_v22, 0.0 }
  0x8c   :  { %v19_v7 = vpop.xlane.xlu0 %18 }
  0x8d   :  { %v41_v8 = vsub.f32 %v12_v0, %v19_v7 }
  0x8f   :  { %v43_v9 = vmul.f32 1.442695, %v41_v8 }
  0x90   :  { %v22_v10 = vpop.xlane.xlu0 %21 }
  0x91   :  { %124 = vpow2.f32 %v43_v9  ;;  %v42_v11 = vsub.f32 %v13_v1, %v22_v10 }
  0x93   :  { %v45_v12 = vmul.f32 1.442695, %v42_v11 }
  0x95   :  { %126 = vpow2.f32 %v45_v12 }
  0x9e   :  { %v125_v17 = vpop.eup %124 }
  0x9f   :  { %v47_v19 = vsel %vm16_vm0, %v125_v17, 0.0 }
  0xa0   :  { %48 = vadd.xlane.f32.xlu0 %v47_v19 }
  0xa2   :  { %v127_v21 = vpop.eup %126 }
  0xa3   :  { %v50_v23 = vsel %vm16_vm0, %v127_v21, 0.0 }
  0xa4   :  { %51 = vadd.xlane.f32.xlu1 %v50_v23  ;;  %36 = vadd.xlane.f32.xlu0 %v35_v20 }
  0xa8   :  { %39 = vadd.xlane.f32.xlu0 %v38_v24 }
 0x129   :  { %v49_v31 = vpop.xlane.xlu0 %48 }
 0x12a   :  { %128 = vlog2.f32 %v49_v31 }
 0x12d   :  { %v52_v32 = vpop.xlane.xlu1 %51  ;;  %v37_v35 = vpop.xlane.xlu0 %36 }
 0x12e   :  { %130 = vlog2.f32 %v52_v32 }
 0x131   :  { %v40_v41 = vpop.xlane.xlu0 %39 }
 0x137   :  { %v129_v33 = vpop.eup %128 }
 0x138   :  { %v54_v34 = vmul.f32 0.6931472, %v129_v33 }
 0x13a   :  { %v57_v36 = vadd.f32 %v54_v34, %v19_v7 }
 0x13b   :  { %v131_v37 = vpop.eup %130 }
 0x13c   :  { %v56_v38 = vmul.f32 0.6931472, %v131_v37  ;;  %v59_v39 = vsub.f32 %v37_v35, %v57_v36 }
 0x13e   :  { %v58_v40 = vadd.f32 %v56_v38, %v22_v10  ;;  %v68_v43 = vsel %vm67_vm5, %v59_v39, 0.0 }
 0x140   :  { %v60_v42 = vsub.f32 %v40_v41, %v58_v40 }
 0x142   :  { %v69_v44 = vsel %vm67_vm5, %v60_v42, 0.0 }
 0x143   :  { %v70_v45 = vadd.f32 %v69_v44, %v68_v43 }
 0x145   :  { %71 = vadd.xlane.f32.xlu0 %v70_v45 }
 0x149   :  { %83 = vadd.xlane.f32.xlu0 %v82_v30 }
 0x1ce   :  { %v72_v46 = vpop.xlane.xlu0 %71 }
 0x1cf   :  { %v73_v47 = vrot.slane %v72_v46, 4 }
 0x1d1   :  { %v74_v48 = vadd.f32 %v73_v47, %v72_v46 }
 0x1d2   :  { %v84_v49 = vpop.xlane.xlu0 %83 }
 0x1d3   :  { %v75_v50 = vrot.slane %v74_v48, 2  ;;  %v85_v51 = vrot.slane %v84_v49, 4 }
 0x1d5   :  { %v86_v52 = vadd.f32 %v85_v51, %v84_v49  ;;  %v76_v53 = vadd.f32 %v75_v50, %v74_v48 }
 0x1d7   :  { %v87_v54 = vrot.slane %v86_v52, 2  ;;  %v77_v55 = vrot.slane %v76_v53, 1 }
 0x1d9   :  { %v88_v56 = vadd.f32 %v87_v54, %v86_v52  ;;  %v78_v57 = vadd.f32 %v77_v55, %v76_v53 }
 0x1db   :  { %115 = vpush %v78_v57  ;;  %v89_v58 = vrot.slane %v88_v56, 1 }
 0x1dd   :  { %v90_v59 = vadd.f32 %v89_v58, %v88_v56 }
 0x1df   :  { %117 = vpush %v90_v59 }
 0x20c   :  { %s116_s0 = spop %115 }
 0x20d   :  { %v95_v61 = vstv %s116_s0 }
 0x210   :  { %s118_s18 = spop %117 }
 0x211   :  { %v96_v62 = vstv %s118_s18 }
 0x212   :  { %v97_v63 = vsel %vm94_vm6, %v95_v61, %v96_v62 }
 0x213   :  { %98 = vst [vmem:[#allocation2] sm:$0xff] %v97_v63 }
 0x214   :  { %143 = shalt.err (!%p140_p4)
}
 0x215   :  { %108 = dma.vmem_to_hbm [thread:$0]  %s106_s17, 128, %s199_s2, [#allocation3]  }
 0x216   :  { %152 = dma.done.wait [#allocation3], 128  }
 0x217   :  { %153 = vsyncadd [#allocation3], 4294967168 }
 0x218   :  { %112 = vsyncpa [#allocation3], 1 }

</bundles_post_ra>
